<compile_context>
chip_gen: v5e
topology: v5e:2x2
jax: 0.10.0
libtpu: 0.0.40
codegen_flags: <defaults>
</compile_context>

<pallas_src>
import jax
import jax.numpy as jnp
from jax import lax
from jax.experimental import pallas as pl
from jax.experimental.pallas import tpu as pltpu

_CHUNK = 1024  # lanes per in-kernel chunk (multiple of 128)


def _conv1x1_hardsigmoid_kernel(x_ref, w_ref, b_ref, o_ref):
    # x_ref: (Cin, M)    pixels lane-dense
    # w_ref: (Cout, Cin) weights pre-scaled by 1/6
    # b_ref: (Cout, 1)   bias pre-folded to (b + 3) / 6
    # o_ref: (Cout, M)
    w = w_ref[...]
    b = b_ref[...]
    cin, m = x_ref.shape

    def fma_tile(x):
        # VPU broadcast FMAs: (Cout,1) * (1,L) -> (Cout,L); unrolled over Cin=3.
        acc = b + w[:, 0:1] * x[0:1, :]
        for ci in range(1, cin):
            acc = acc + w[:, ci:ci + 1] * x[ci:ci + 1, :]
        # Folded hard-sigmoid epilogue.
        return jnp.clip(acc, 0.0, 1.0).astype(o_ref.dtype)

    n_full = m // _CHUNK
    rem = m - n_full * _CHUNK

    if n_full > 0:
        def step(i, carry):
            s = pl.multiple_of(i * _CHUNK, _CHUNK)
            o_ref[:, pl.ds(s, _CHUNK)] = fma_tile(x_ref[:, pl.ds(s, _CHUNK)])
            return carry
        lax.fori_loop(0, n_full, step, 0, unroll=True)

    if rem > 0:  # static tail chunk (aligned start, masked store handled once)
        s = n_full * _CHUNK
        o_ref[:, pl.ds(s, rem)] = fma_tile(x_ref[:, pl.ds(s, rem)])


def model_forward(x, w, b):
    """x: (N, Cin, H, W) f32; w: (Cout, Cin, 1, 1); b: (Cout,).
    Returns hardsigmoid(conv1x1_pad1(x)) with shape (N, Cout, H+2, W+2)."""
    N, Cin, H, W = x.shape
    Cout = w.shape[0]
    Hp, Wp = H + 2, W + 2

    # Conv2d(kernel=1, padding=1): padded border pixels see only zeros -> bias-only.
    xp = jnp.pad(x, ((0, 0), (0, 0), (1, 1), (1, 1)))

    # Channels-first, lane-dense flatten: (N, Cin, Hp, Wp) -> (Cin, N*Hp*Wp).
    # For N == 1 the transpose is a no-op reshape.
    M = N * Hp * Wp
    xm = jnp.transpose(xp, (1, 0, 2, 3)).reshape(Cin, M)

    # Fold hard-sigmoid constants:
    #   clamp(x.w + b + 3, 0, 6)/6 == clamp(x.(w/6) + (b+3)/6, 0, 1)
    wm = (w.reshape(Cout, Cin) / 6.0).astype(jnp.float32)
    bm = ((b.astype(jnp.float32) + 3.0) / 6.0).reshape(Cout, 1)

    # Single grid step: full-M block (legal since it equals the array dim);
    # no lane-tail padding, no output slice.
    out = pl.pallas_call(
        _conv1x1_hardsigmoid_kernel,
        out_shape=jax.ShapeDtypeStruct((Cout, M), jnp.float32),
        grid=(1,),
        in_specs=[
            pl.BlockSpec((Cin, M), lambda i: (0, 0)),
            pl.BlockSpec((Cout, Cin), lambda i: (0, 0)),
            pl.BlockSpec((Cout, 1), lambda i: (0, 0)),
        ],
        out_specs=pl.BlockSpec((Cout, M), lambda i: (0, 0)),
    )(xm, wm, bm)

    # (Cout, M) -> (N, Cout, Hp, Wp); transpose is free for N == 1.
    return out.reshape(Cout, N, Hp, Wp).transpose(1, 0, 2, 3)


def _reference(x, w, b):
    # Plain-JAX reference for verification.
    v3 = lax.conv_general_dilated(
        x, w, window_strides=(1, 1), padding=((1, 1), (1, 1)),
        dimension_numbers=("NCHW", "OIHW", "NCHW"))
    v3 = v3 + b.reshape(1, -1, 1, 1)
    return jnp.clip(v3 + 3.0, 0.0, 6.0) / 6.0


if __name__ == "__main__":
    key = jax.random.PRNGKey(0)
    kx, kw, kb = jax.random.split(key, 3)

    # Shapes consistent with the module: Conv2d(3 -> 8, 1x1, padding=1), x1 = (1, 3, 64, 64).
    N, Cin, H, W = 1, 3, 64, 64
    Cout = 8

    x = jax.random.normal(kx, (N, Cin, H, W), dtype=jnp.float32)
    w = jax.random.normal(kw, (Cout, Cin, 1, 1), dtype=jnp.float32) * 0.5
    b = jax.random.normal(kb, (Cout,), dtype=jnp.float32) * 0.5

    out = jax.block_until_ready(model_forward(x, w, b))

    ref = _reference(x, w, b)
    assert out.shape == (N, Cout, H + 2, W + 2), out.shape
    assert jnp.allclose(out, ref, atol=1e-5, rtol=1e-5), float(
        jnp.max(jnp.abs(out - ref)))

    print("KERNEL_OK")
</pallas_src>

<mosaic_0001>
module attributes {stable_mosaic.version = 11 : i64} {
  func.func @_conv1x1_hardsigmoid_kernel(%arg0: i32, %arg1: memref<3x4356xf32, #tpu.memory_space<vmem>>, %arg2: memref<8x3xf32, #tpu.memory_space<vmem>>, %arg3: memref<8x1xf32, #tpu.memory_space<vmem>>, %arg4: memref<8x4356xf32, #tpu.memory_space<vmem>>) attributes {dimension_semantics = [#tpu.dimension_semantics<arbitrary>], iteration_bounds = array<i64: 1>, scalar_prefetch = 0 : i64, scratch_operands = 0 : i64, tpu.core_type = #tpu.core_type<tc>, window_params = [{pipeline_mode = #tpu.pipeline_mode<synchronous>, transform_indices = @transform_0, window_bounds = array<i64: 3, 4356>}, {pipeline_mode = #tpu.pipeline_mode<synchronous>, transform_indices = @transform_1, window_bounds = array<i64: 8, 3>}, {pipeline_mode = #tpu.pipeline_mode<synchronous>, transform_indices = @transform_2, window_bounds = array<i64: 8, 1>}, {pipeline_mode = #tpu.pipeline_mode<synchronous>, transform_indices = @transform_3, window_bounds = array<i64: 8, 4356>}]} {
    %c0 = arith.constant 0 : index
    %c0_0 = arith.constant 0 : index
    %0 = vector.load %arg2[%c0, %c0_0] : memref<8x3xf32, #tpu.memory_space<vmem>>, vector<8x3xf32>
    %c0_1 = arith.constant 0 : index
    %c0_2 = arith.constant 0 : index
    %1 = vector.load %arg3[%c0_1, %c0_2] : memref<8x1xf32, #tpu.memory_space<vmem>>, vector<8x1xf32>
    %c0_i32 = arith.constant 0 : i32
    %c1024_i32 = arith.constant 1024 : i32
    %2 = arith.muli %c0_i32, %c1024_i32 : i32
    %3 = tpu.assume_multiple %2, 1024 : i32
    %c0_3 = arith.constant 0 : index
    %4 = arith.index_cast %3 : i32 to index
    %5 = vector.load %arg1[%c0_3, %4] : memref<3x4356xf32, #tpu.memory_space<vmem>>, vector<3x1024xf32>
    %6 = vector.extract_strided_slice %0 {offsets = [0, 0], sizes = [8, 1], strides = [1, 1]} : vector<8x3xf32> to vector<8x1xf32>
    %7 = vector.extract_strided_slice %5 {offsets = [0, 0], sizes = [1, 1024], strides = [1, 1]} : vector<3x1024xf32> to vector<1x1024xf32>
    %8 = vector.broadcast %6 : vector<8x1xf32> to vector<8x1024xf32>
    %9 = vector.broadcast %7 : vector<1x1024xf32> to vector<8x1024xf32>
    %10 = arith.mulf %8, %9 : vector<8x1024xf32>
    %11 = vector.broadcast %1 : vector<8x1xf32> to vector<8x1024xf32>
    %12 = arith.addf %11, %10 : vector<8x1024xf32>
    %13 = vector.extract_strided_slice %0 {offsets = [0, 1], sizes = [8, 1], strides = [1, 1]} : vector<8x3xf32> to vector<8x1xf32>
    %14 = vector.extract_strided_slice %5 {offsets = [1, 0], sizes = [1, 1024], strides = [1, 1]} : vector<3x1024xf32> to vector<1x1024xf32>
    %15 = vector.broadcast %13 : vector<8x1xf32> to vector<8x1024xf32>
    %16 = vector.broadcast %14 : vector<1x1024xf32> to vector<8x1024xf32>
    %17 = arith.mulf %15, %16 : vector<8x1024xf32>
    %18 = arith.addf %12, %17 : vector<8x1024xf32>
    %19 = vector.extract_strided_slice %0 {offsets = [0, 2], sizes = [8, 1], strides = [1, 1]} : vector<8x3xf32> to vector<8x1xf32>
    %20 = vector.extract_strided_slice %5 {offsets = [2, 0], sizes = [1, 1024], strides = [1, 1]} : vector<3x1024xf32> to vector<1x1024xf32>
    %21 = vector.broadcast %19 : vector<8x1xf32> to vector<8x1024xf32>
    %22 = vector.broadcast %20 : vector<1x1024xf32> to vector<8x1024xf32>
    %23 = arith.mulf %21, %22 : vector<8x1024xf32>
    %24 = arith.addf %18, %23 : vector<8x1024xf32>
    %cst = arith.constant 0.000000e+00 : f32
    %cst_4 = arith.constant 1.000000e+00 : f32
    %25 = vector.broadcast %cst : f32 to vector<8x1024xf32>
    %26 = arith.maximumf %25, %24 : vector<8x1024xf32>
    %27 = vector.broadcast %cst_4 : f32 to vector<8x1024xf32>
    %28 = arith.minimumf %27, %26 : vector<8x1024xf32>
    %c0_5 = arith.constant 0 : index
    %29 = arith.index_cast %3 : i32 to index
    %30 = vector.load %arg4[%c0_5, %29] : memref<8x4356xf32, #tpu.memory_space<vmem>>, vector<8x1024xf32>
    tpu.vector_store %arg4[%c0_5, %29], %28 {strides = array<i32>} : memref<8x4356xf32, #tpu.memory_space<vmem>>, vector<8x1024xf32>,
    %c1_i32 = arith.constant 1 : i32
    %c1024_i32_6 = arith.constant 1024 : i32
    %31 = arith.muli %c1_i32, %c1024_i32_6 : i32
    %32 = tpu.assume_multiple %31, 1024 : i32
    %c0_7 = arith.constant 0 : index
    %33 = arith.index_cast %32 : i32 to index
    %34 = vector.load %arg1[%c0_7, %33] : memref<3x4356xf32, #tpu.memory_space<vmem>>, vector<3x1024xf32>
    %35 = vector.extract_strided_slice %0 {offsets = [0, 0], sizes = [8, 1], strides = [1, 1]} : vector<8x3xf32> to vector<8x1xf32>
    %36 = vector.extract_strided_slice %34 {offsets = [0, 0], sizes = [1, 1024], strides = [1, 1]} : vector<3x1024xf32> to vector<1x1024xf32>
    %37 = vector.broadcast %35 : vector<8x1xf32> to vector<8x1024xf32>
    %38 = vector.broadcast %36 : vector<1x1024xf32> to vector<8x1024xf32>
    %39 = arith.mulf %37, %38 : vector<8x1024xf32>
    %40 = vector.broadcast %1 : vector<8x1xf32> to vector<8x1024xf32>
    %41 = arith.addf %40, %39 : vector<8x1024xf32>
    %42 = vector.extract_strided_slice %0 {offsets = [0, 1], sizes = [8, 1], strides = [1, 1]} : vector<8x3xf32> to vector<8x1xf32>
    %43 = vector.extract_strided_slice %34 {offsets = [1, 0], sizes = [1, 1024], strides = [1, 1]} : vector<3x1024xf32> to vector<1x1024xf32>
    %44 = vector.broadcast %42 : vector<8x1xf32> to vector<8x1024xf32>
    %45 = vector.broadcast %43 : vector<1x1024xf32> to vector<8x1024xf32>
    %46 = arith.mulf %44, %45 : vector<8x1024xf32>
    %47 = arith.addf %41, %46 : vector<8x1024xf32>
    %48 = vector.extract_strided_slice %0 {offsets = [0, 2], sizes = [8, 1], strides = [1, 1]} : vector<8x3xf32> to vector<8x1xf32>
    %49 = vector.extract_strided_slice %34 {offsets = [2, 0], sizes = [1, 1024], strides = [1, 1]} : vector<3x1024xf32> to vector<1x1024xf32>
    %50 = vector.broadcast %48 : vector<8x1xf32> to vector<8x1024xf32>
    %51 = vector.broadcast %49 : vector<1x1024xf32> to vector<8x1024xf32>
    %52 = arith.mulf %50, %51 : vector<8x1024xf32>
    %53 = arith.addf %47, %52 : vector<8x1024xf32>
    %cst_8 = arith.constant 0.000000e+00 : f32
    %cst_9 = arith.constant 1.000000e+00 : f32
    %54 = vector.broadcast %cst_8 : f32 to vector<8x1024xf32>
    %55 = arith.maximumf %54, %53 : vector<8x1024xf32>
    %56 = vector.broadcast %cst_9 : f32 to vector<8x1024xf32>
    %57 = arith.minimumf %56, %55 : vector<8x1024xf32>
    %c0_10 = arith.constant 0 : index
    %58 = arith.index_cast %32 : i32 to index
    %59 = vector.load %arg4[%c0_10, %58] : memref<8x4356xf32, #tpu.memory_space<vmem>>, vector<8x1024xf32>
    tpu.vector_store %arg4[%c0_10, %58], %57 {strides = array<i32>} : memref<8x4356xf32, #tpu.memory_space<vmem>>, vector<8x1024xf32>,
    %c2_i32 = arith.constant 2 : i32
    %c1024_i32_11 = arith.constant 1024 : i32
    %60 = arith.muli %c2_i32, %c1024_i32_11 : i32
    %61 = tpu.assume_multiple %60, 1024 : i32
    %c0_12 = arith.constant 0 : index
    %62 = arith.index_cast %61 : i32 to index
    %63 = vector.load %arg1[%c0_12, %62] : memref<3x4356xf32, #tpu.memory_space<vmem>>, vector<3x1024xf32>
    %64 = vector.extract_strided_slice %0 {offsets = [0, 0], sizes = [8, 1], strides = [1, 1]} : vector<8x3xf32> to vector<8x1xf32>
    %65 = vector.extract_strided_slice %63 {offsets = [0, 0], sizes = [1, 1024], strides = [1, 1]} : vector<3x1024xf32> to vector<1x1024xf32>
    %66 = vector.broadcast %64 : vector<8x1xf32> to vector<8x1024xf32>
    %67 = vector.broadcast %65 : vector<1x1024xf32> to vector<8x1024xf32>
    %68 = arith.mulf %66, %67 : vector<8x1024xf32>
    %69 = vector.broadcast %1 : vector<8x1xf32> to vector<8x1024xf32>
    %70 = arith.addf %69, %68 : vector<8x1024xf32>
    %71 = vector.extract_strided_slice %0 {offsets = [0, 1], sizes = [8, 1], strides = [1, 1]} : vector<8x3xf32> to vector<8x1xf32>
    %72 = vector.extract_strided_slice %63 {offsets = [1, 0], sizes = [1, 1024], strides = [1, 1]} : vector<3x1024xf32> to vector<1x1024xf32>
    %73 = vector.broadcast %71 : vector<8x1xf32> to vector<8x1024xf32>
    %74 = vector.broadcast %72 : vector<1x1024xf32> to vector<8x1024xf32>
    %75 = arith.mulf %73, %74 : vector<8x1024xf32>
    %76 = arith.addf %70, %75 : vector<8x1024xf32>
    %77 = vector.extract_strided_slice %0 {offsets = [0, 2], sizes = [8, 1], strides = [1, 1]} : vector<8x3xf32> to vector<8x1xf32>
    %78 = vector.extract_strided_slice %63 {offsets = [2, 0], sizes = [1, 1024], strides = [1, 1]} : vector<3x1024xf32> to vector<1x1024xf32>
    %79 = vector.broadcast %77 : vector<8x1xf32> to vector<8x1024xf32>
    %80 = vector.broadcast %78 : vector<1x1024xf32> to vector<8x1024xf32>
    %81 = arith.mulf %79, %80 : vector<8x1024xf32>
    %82 = arith.addf %76, %81 : vector<8x1024xf32>
    %cst_13 = arith.constant 0.000000e+00 : f32
    %cst_14 = arith.constant 1.000000e+00 : f32
    %83 = vector.broadcast %cst_13 : f32 to vector<8x1024xf32>
    %84 = arith.maximumf %83, %82 : vector<8x1024xf32>
    %85 = vector.broadcast %cst_14 : f32 to vector<8x1024xf32>
    %86 = arith.minimumf %85, %84 : vector<8x1024xf32>
    %c0_15 = arith.constant 0 : index
    %87 = arith.index_cast %61 : i32 to index
    %88 = vector.load %arg4[%c0_15, %87] : memref<8x4356xf32, #tpu.memory_space<vmem>>, vector<8x1024xf32>
    tpu.vector_store %arg4[%c0_15, %87], %86 {strides = array<i32>} : memref<8x4356xf32, #tpu.memory_space<vmem>>, vector<8x1024xf32>,
    %c3_i32 = arith.constant 3 : i32
    %c1024_i32_16 = arith.constant 1024 : i32
    %89 = arith.muli %c3_i32, %c1024_i32_16 : i32
    %90 = tpu.assume_multiple %89, 1024 : i32
    %c0_17 = arith.constant 0 : index
    %91 = arith.index_cast %90 : i32 to index
    %92 = vector.load %arg1[%c0_17, %91] : memref<3x4356xf32, #tpu.memory_space<vmem>>, vector<3x1024xf32>
    %93 = vector.extract_strided_slice %0 {offsets = [0, 0], sizes = [8, 1], strides = [1, 1]} : vector<8x3xf32> to vector<8x1xf32>
    %94 = vector.extract_strided_slice %92 {offsets = [0, 0], sizes = [1, 1024], strides = [1, 1]} : vector<3x1024xf32> to vector<1x1024xf32>
    %95 = vector.broadcast %93 : vector<8x1xf32> to vector<8x1024xf32>
    %96 = vector.broadcast %94 : vector<1x1024xf32> to vector<8x1024xf32>
    %97 = arith.mulf %95, %96 : vector<8x1024xf32>
    %98 = vector.broadcast %1 : vector<8x1xf32> to vector<8x1024xf32>
    %99 = arith.addf %98, %97 : vector<8x1024xf32>
    %100 = vector.extract_strided_slice %0 {offsets = [0, 1], sizes = [8, 1], strides = [1, 1]} : vector<8x3xf32> to vector<8x1xf32>
    %101 = vector.extract_strided_slice %92 {offsets = [1, 0], sizes = [1, 1024], strides = [1, 1]} : vector<3x1024xf32> to vector<1x1024xf32>
    %102 = vector.broadcast %100 : vector<8x1xf32> to vector<8x1024xf32>
    %103 = vector.broadcast %101 : vector<1x1024xf32> to vector<8x1024xf32>
    %104 = arith.mulf %102, %103 : vector<8x1024xf32>
    %105 = arith.addf %99, %104 : vector<8x1024xf32>
    %106 = vector.extract_strided_slice %0 {offsets = [0, 2], sizes = [8, 1], strides = [1, 1]} : vector<8x3xf32> to vector<8x1xf32>
    %107 = vector.extract_strided_slice %92 {offsets = [2, 0], sizes = [1, 1024], strides = [1, 1]} : vector<3x1024xf32> to vector<1x1024xf32>
    %108 = vector.broadcast %106 : vector<8x1xf32> to vector<8x1024xf32>
    %109 = vector.broadcast %107 : vector<1x1024xf32> to vector<8x1024xf32>
    %110 = arith.mulf %108, %109 : vector<8x1024xf32>
    %111 = arith.addf %105, %110 : vector<8x1024xf32>
    %cst_18 = arith.constant 0.000000e+00 : f32
    %cst_19 = arith.constant 1.000000e+00 : f32
    %112 = vector.broadcast %cst_18 : f32 to vector<8x1024xf32>
    %113 = arith.maximumf %112, %111 : vector<8x1024xf32>
    %114 = vector.broadcast %cst_19 : f32 to vector<8x1024xf32>
    %115 = arith.minimumf %114, %113 : vector<8x1024xf32>
    %c0_20 = arith.constant 0 : index
    %116 = arith.index_cast %90 : i32 to index
    %117 = vector.load %arg4[%c0_20, %116] : memref<8x4356xf32, #tpu.memory_space<vmem>>, vector<8x1024xf32>
    tpu.vector_store %arg4[%c0_20, %116], %115 {strides = array<i32>} : memref<8x4356xf32, #tpu.memory_space<vmem>>, vector<8x1024xf32>,
    %c4_i32 = arith.constant 4 : i32
    %c0_21 = arith.constant 0 : index
    %c4096 = arith.constant 4096 : index
    %118 = vector.load %arg1[%c0_21, %c4096] : memref<3x4356xf32, #tpu.memory_space<vmem>>, vector<3x260xf32>
    %119 = vector.extract_strided_slice %0 {offsets = [0, 0], sizes = [8, 1], strides = [1, 1]} : vector<8x3xf32> to vector<8x1xf32>
    %120 = vector.extract_strided_slice %118 {offsets = [0, 0], sizes = [1, 260], strides = [1, 1]} : vector<3x260xf32> to vector<1x260xf32>
    %121 = vector.broadcast %119 : vector<8x1xf32> to vector<8x260xf32>
    %122 = vector.broadcast %120 : vector<1x260xf32> to vector<8x260xf32>
    %123 = arith.mulf %121, %122 : vector<8x260xf32>
    %124 = vector.broadcast %1 : vector<8x1xf32> to vector<8x260xf32>
    %125 = arith.addf %124, %123 : vector<8x260xf32>
    %126 = vector.extract_strided_slice %0 {offsets = [0, 1], sizes = [8, 1], strides = [1, 1]} : vector<8x3xf32> to vector<8x1xf32>
    %127 = vector.extract_strided_slice %118 {offsets = [1, 0], sizes = [1, 260], strides = [1, 1]} : vector<3x260xf32> to vector<1x260xf32>
    %128 = vector.broadcast %126 : vector<8x1xf32> to vector<8x260xf32>
    %129 = vector.broadcast %127 : vector<1x260xf32> to vector<8x260xf32>
    %130 = arith.mulf %128, %129 : vector<8x260xf32>
    %131 = arith.addf %125, %130 : vector<8x260xf32>
    %132 = vector.extract_strided_slice %0 {offsets = [0, 2], sizes = [8, 1], strides = [1, 1]} : vector<8x3xf32> to vector<8x1xf32>
    %133 = vector.extract_strided_slice %118 {offsets = [2, 0], sizes = [1, 260], strides = [1, 1]} : vector<3x260xf32> to vector<1x260xf32>
    %134 = vector.broadcast %132 : vector<8x1xf32> to vector<8x260xf32>
    %135 = vector.broadcast %133 : vector<1x260xf32> to vector<8x260xf32>
    %136 = arith.mulf %134, %135 : vector<8x260xf32>
    %137 = arith.addf %131, %136 : vector<8x260xf32>
    %cst_22 = arith.constant 0.000000e+00 : f32
    %cst_23 = arith.constant 1.000000e+00 : f32
    %138 = vector.broadcast %cst_22 : f32 to vector<8x260xf32>
    %139 = arith.maximumf %138, %137 : vector<8x260xf32>
    %140 = vector.broadcast %cst_23 : f32 to vector<8x260xf32>
    %141 = arith.minimumf %140, %139 : vector<8x260xf32>
    %c0_24 = arith.constant 0 : index
    %c4096_25 = arith.constant 4096 : index
    %142 = vector.load %arg4[%c0_24, %c4096_25] : memref<8x4356xf32, #tpu.memory_space<vmem>>, vector<8x260xf32>
    tpu.vector_store %arg4[%c0_24, %c4096_25], %141 {strides = array<i32>} : memref<8x4356xf32, #tpu.memory_space<vmem>>, vector<8x260xf32>,
    return
  }
  func.func @transform_0(%arg0: i32) -> (i32, i32) {
    %c0_i32 = arith.constant 0 : i32
    %c0_i32_0 = arith.constant 0 : i32
    %c0_i32_1 = arith.constant 0 : i32
    return %c0_i32, %c0_i32_0 : i32, i32
  }
  func.func @transform_1(%arg0: i32) -> (i32, i32) {
    %c0_i32 = arith.constant 0 : i32
    %c0_i32_0 = arith.constant 0 : i32
    %c0_i32_1 = arith.constant 0 : i32
    return %c0_i32, %c0_i32_0 : i32, i32
  }
  func.func @transform_2(%arg0: i32) -> (i32, i32) {
    %c0_i32 = arith.constant 0 : i32
    %c0_i32_0 = arith.constant 0 : i32
    %c0_i32_1 = arith.constant 0 : i32
    return %c0_i32, %c0_i32_0 : i32, i32
  }
  func.func @transform_3(%arg0: i32) -> (i32, i32) {
    %c0_i32 = arith.constant 0 : i32
    %c0_i32_0 = arith.constant 0 : i32
    %c0_i32_1 = arith.constant 0 : i32
    return %c0_i32, %c0_i32_0 : i32, i32
  }
}

</mosaic_0001>

<bundles_post_ra>
// kernel: tpu_custom_call.1
= control target key start
LH: loop header
LB: loop body
LE: loop exit
PB: predicated region body
PF: predicated region fallthrough
CT: control target
= control target key end

     0   :  { %8 = vsyncpa [#allocation3], 0  ;;  %s1741_s0 = inlined_call_operand.hbm [shape: f32[3,4356], index: 0, kind: input, shape index: {}]   ;;  %s1742_s1 = inlined_call_operand.vmem [shape: f32[8,3], index: 1, kind: input, shape index: {}]   ;;  %s1743_s2 = inlined_call_operand.vmem [shape: f32[8,1], index: 2, kind: input, shape index: {}]   ;;  %s1744_s3 = inlined_call_operand.hbm [shape: f32[8,4356], index: 3, kind: output, shape index: {}]  }
   0x1   :  { %9 = vsyncpa [#allocation4], 0  ;;  %s15_s14 = sshll.u32 %s1741_s0, 4  ;;  %s800_s15 = smov [#allocation2]   ;;  %s16_s14 = int_to_ptr.hbm [resolvable:$true] %s15_s14 }
   0x2   :  { %s17_s16 = sshll.u32 %s800_s15, 4  ;;  %s18_s16 = int_to_ptr.vmem [resolvable:$true] %s17_s16 }
   0x3   :  { %20 = dma.hbm_to_vmem [thread:$0]  %s16_s14, 2240, %s18_s16, [#allocation3]  }
   0x4   :  { %796 = dma.done.wait [#allocation3], 2240  }
   0x5   :  { %797 = vsyncadd [#allocation3], 4294965056  ;;  %v801_v0 = vmov 0   ;;  %v802_v1 = vmov 1   ;;  %v29_v2 = vld [vmem:[%s1742_s1] sm:$0xff]  ;;  %v803_v4 = vmov 2  }
   0x6   :  { %744 = vset.pattern.permute.xlu0 %v801_v0  ;;  %745 = vset.pattern.permute.xlu1 %v802_v1  ;;  %v30_v3 = vld [vmem:[%s1743_s2] sm:$0xff]  ;;  %v836_v6 = vld [vmem:[#allocation2 + $0x8] sm:$0x77]  ;;  %v838_v7 = vld [vmem:[#allocation2 + $0x10] sm:$0x77]  ;;  %s804_s0 = smov [#allocation5]  }
   0x7   :  { %37 = vperm.xlu0 %744, %v29_v2   ;;  %90 = vperm.xlu1 %745, %v29_v2   ;;  %v834_v5 = vld [vmem:[#allocation2] sm:$0x77]  ;;  %1781 = vst [vmem:[#allocation9_spill] sm:$0xff] %v836_v6  ;;  %v840_v8 = vld [vmem:[#allocation2 + $0x18] sm:$0x77]  ;;  %v46_v11 = vperm.slane %v836_v6, 0 }
   0x8   :  { %1780 = vst [vmem:[#allocation8_spill] sm:$0xff] %v834_v5  ;;  %v44_v9 = vperm.slane %v834_v5, 0  ;;  %v45_v10 = vperm.slane %v834_v5, 4  ;;  %v47_v12 = vperm.slane %v836_v6, 4  ;;  %v48_v13 = vperm.slane %v838_v7, 0  ;;  %s727_s1 = sshll.u32 %s804_s0, 4  ;;  %s728_s1 = int_to_ptr.vmem [resolvable:$true] %s727_s1 }
   0x9   :  { %1782 = vst [vmem:[#allocation10_spill] sm:$0xff] %v838_v7  ;;  %v49_v14 = vperm.slane %v838_v7, 4  ;;  %v50_v15 = vperm.slane %v840_v8, 0  ;;  %v51_v16 = vperm.slane %v840_v8, 4  ;;  %v854_v19 = vperm.slane %v46_v11, 0  ;;  %s729_s22 = sshll.u32 %s1744_s3, 4  ;;  %s730_s22 = int_to_ptr.hbm [resolvable:$true] %s729_s22 }
   0xa   :  { %1783 = vst [vmem:[#allocation11_spill] sm:$0xff] %v840_v8  ;;  %v850_v17 = vperm.slane %v44_v9, 0  ;;  %v852_v18 = vperm.slane %v45_v10, 0  ;;  %v856_v20 = vperm.slane %v47_v12, 0  ;;  %v93_v21 = vperm.slane %v834_v5, 1 }
   0xb   :  { %v94_v22 = vperm.slane %v834_v5, 5  ;;  %v860_v23 = vld [vmem:[#allocation2 + $0x20] sm:$0x77]  ;;  %v862_v24 = vperm.slane %v48_v13, 0  ;;  %v864_v25 = vperm.slane %v49_v14, 0  ;;  %v95_v26 = vperm.slane %v836_v6, 1 }
   0xc   :  { %1784 = vst [vmem:[#allocation12_spill] sm:$0xff] %v860_v23  ;;  %v96_v27 = vperm.slane %v836_v6, 5  ;;  %v868_v28 = vld [vmem:[#allocation2 + $0x28] sm:$0x77]  ;;  %v97_v29 = vperm.slane %v838_v7, 1  ;;  %v98_v30 = vperm.slane %v838_v7, 5 }
   0xd   :  { %1785 = vst [vmem:[#allocation13_spill] sm:$0xff] %v868_v28  ;;  %v99_v31 = vperm.slane %v840_v8, 1  ;;  %v100_v32 = vperm.slane %v840_v8, 5  ;;  %v874_v33 = vld [vmem:[#allocation2 + $0x30] sm:$0x77]  ;;  %v876_v34 = vperm.slane %v50_v15, 0 }
   0xe   :  { %1786 = vst [vmem:[#allocation14_spill] sm:$0xff] %v874_v33  ;;  %v878_v35 = vperm.slane %v51_v16, 0  ;;  %v880_v36 = vperm.slane %v93_v21, 1  ;;  %v882_v37 = vperm.slane %v94_v22, 1  ;;  %v884_v38 = vld [vmem:[#allocation2 + $0x38] sm:$0x77] }
   0xf   :  { %78 = vperm.xlu0 %744, %v30_v3   ;;  %746 = vset.pattern.permute.xlu1 %v803_v4  ;;  %1787 = vst [vmem:[#allocation15_spill] sm:$0xff] %v884_v38  ;;  %v210_v39 = vperm.slane %v860_v23, 0  ;;  %v211_v40 = vperm.slane %v860_v23, 4  ;;  %v212_v41 = vperm.slane %v868_v28, 0  ;;  %v213_v42 = vperm.slane %v868_v28, 4 }
  0x10   :  { %134 = vperm.xlu1 %746, %v29_v2   ;;  %v890_v43 = vperm.slane %v95_v26, 1  ;;  %v892_v44 = vperm.slane %v96_v27, 1  ;;  %v214_v45 = vperm.slane %v874_v33, 0  ;;  %v215_v46 = vperm.slane %v874_v33, 4  ;;  %v916_v59 = vld [vmem:[#allocation2 + $0x40] sm:$0x77] }
  0x11   :  { %v896_v47 = vperm.slane %v97_v29, 1  ;;  %v898_v48 = vperm.slane %v98_v30, 1  ;;  %v900_v49 = vperm.slane %v99_v31, 1  ;;  %v902_v50 = vperm.slane %v100_v32, 1  ;;  %1788 = vst [vmem:[#allocation16_spill] sm:$0xff] %v916_v59 }
  0x12   :  { %v216_v51 = vperm.slane %v884_v38, 0  ;;  %v217_v52 = vperm.slane %v884_v38, 4  ;;  %v906_v53 = vperm.slane %v210_v39, 0  ;;  %v908_v54 = vperm.slane %v211_v40, 0  ;;  %v924_v0 = vld [vmem:[#allocation2 + $0x48] sm:$0x77] }
  0x13   :  { %v910_v55 = vperm.slane %v212_v41, 0  ;;  %v912_v56 = vperm.slane %v213_v42, 0  ;;  %v250_v57 = vperm.slane %v860_v23, 1  ;;  %v251_v58 = vperm.slane %v860_v23, 5  ;;  %1789 = vst [vmem:[#allocation17_spill] sm:$0xff] %v924_v0 }
  0x14   :  { %v918_v60 = vperm.slane %v214_v45, 0  ;;  %v920_v61 = vperm.slane %v215_v46, 0  ;;  %v252_v62 = vperm.slane %v868_v28, 1  ;;  %v253_v63 = vperm.slane %v868_v28, 5  ;;  %v930_v9 = vld [vmem:[#allocation2 + $0x50] sm:$0x77] }
  0x15   :  { %v254_v1 = vperm.slane %v874_v33, 1  ;;  %v255_v2 = vperm.slane %v874_v33, 5  ;;  %v256_v3 = vperm.slane %v884_v38, 1  ;;  %1790 = vst [vmem:[#allocation18_spill] sm:$0xff] %v930_v9  ;;  %v932_v10 = vperm.slane %v216_v51, 0 }
  0x16   :  { %v934_v11 = vperm.slane %v217_v52, 0  ;;  %v936_v12 = vperm.slane %v250_v57, 1  ;;  %v938_v13 = vperm.slane %v251_v58, 1  ;;  %v940_v14 = vld [vmem:[#allocation2 + $0x58] sm:$0x77]  ;;  %v364_v15 = vperm.slane %v916_v59, 0 }
  0x17   :  { %747 = vset.pattern.permute.xlu0 %v803_v4  ;;  %v257_v4 = vperm.slane %v884_v38, 5  ;;  %1791 = vst [vmem:[#allocation19_spill] sm:$0xff] %v940_v14  ;;  %v365_v16 = vperm.slane %v916_v59, 4  ;;  %v366_v21 = vperm.slane %v924_v0, 0  ;;  %v367_v22 = vperm.slane %v924_v0, 4 }
  0x18   :  { %v946_v26 = vperm.slane %v252_v62, 1  ;;  %v948_v27 = vperm.slane %v253_v63, 1  ;;  %v368_v29 = vperm.slane %v930_v9, 0  ;;  %v369_v30 = vperm.slane %v930_v9, 4  ;;  %v972_v62 = vld [vmem:[#allocation2 + $0x60] sm:$0x77] }
  0x19   :  { %v952_v31 = vperm.slane %v254_v1, 1  ;;  %v954_v32 = vperm.slane %v255_v2, 1  ;;  %v956_v39 = vperm.slane %v256_v3, 1  ;;  %v958_v40 = vperm.slane %v257_v4, 1  ;;  %1792 = vst [vmem:[#allocation20_spill] sm:$0xff] %v972_v62 }
  0x1a   :  { %v370_v41 = vperm.slane %v940_v14, 0  ;;  %v371_v42 = vperm.slane %v940_v14, 4  ;;  %v962_v45 = vperm.slane %v364_v15, 0  ;;  %v964_v46 = vperm.slane %v365_v16, 0  ;;  %v980_v4 = vld [vmem:[#allocation2 + $0x68] sm:$0x77] }
  0x1b   :  { %v966_v51 = vperm.slane %v366_v21, 0  ;;  %v968_v52 = vperm.slane %v367_v22, 0  ;;  %v404_v57 = vperm.slane %v916_v59, 1  ;;  %v405_v58 = vperm.slane %v916_v59, 5  ;;  %1793 = vst [vmem:[#allocation21_spill] sm:$0xff] %v980_v4 }
  0x1c   :  { %v974_v63 = vperm.slane %v368_v29, 0  ;;  %v976_v1 = vperm.slane %v369_v30, 0  ;;  %v406_v2 = vperm.slane %v924_v0, 1  ;;  %v407_v3 = vperm.slane %v924_v0, 5  ;;  %v986_v59 = vld [vmem:[#allocation2 + $0x70] sm:$0x77] }
  0x1d   :  { %v408_v15 = vperm.slane %v930_v9, 1  ;;  %v409_v16 = vperm.slane %v930_v9, 5  ;;  %v410_v21 = vperm.slane %v940_v14, 1  ;;  %v411_v22 = vperm.slane %v940_v14, 5  ;;  %1794 = vst [vmem:[#allocation22_spill] sm:$0xff] %v986_v59 }
  0x1e   :  { %v988_v29 = vperm.slane %v370_v41, 0  ;;  %v990_v30 = vperm.slane %v371_v42, 0  ;;  %v992_v38 = vperm.slane %v404_v57, 1  ;;  %v994_v33 = vperm.slane %v405_v58, 1  ;;  %v996_v0 = vld [vmem:[#allocation2 + $0x78] sm:$0x77] }
  0x1f   :  { %1797 = vst [vmem:[#allocation25_spill] sm:$0xff] %v996_v0  ;;  %v518_v28 = vperm.slane %v972_v62, 0  ;;  %v519_v9 = vperm.slane %v972_v62, 4  ;;  %v520_v23 = vperm.slane %v980_v4, 0  ;;  %v521_v14 = vperm.slane %v980_v4, 4 }
  0x20   :  { %1795 = vst [vmem:[#allocation23_spill] sm:$0xff] %v992_v38  ;;  %v1002_v8 = vperm.slane %v406_v2, 1  ;;  %v1004_v41 = vperm.slane %v407_v3, 1  ;;  %v522_v42 = vperm.slane %v986_v59, 0  ;;  %v523_v57 = vperm.slane %v986_v59, 4 }
  0x21   :  { %1796 = vst [vmem:[#allocation24_spill] sm:$0xff] %v994_v33  ;;  %v1008_v58 = vperm.slane %v408_v15, 1  ;;  %v1010_v7 = vperm.slane %v409_v16, 1  ;;  %v1012_v6 = vperm.slane %v410_v21, 1  ;;  %v1014_v5 = vperm.slane %v411_v22, 1 }
  0x22   :  { %1798 = vst [vmem:[#allocation26_spill] sm:$0xff] %v1002_v8  ;;  %v524_v33 = vperm.slane %v996_v0, 0  ;;  %v525_v38 = vperm.slane %v996_v0, 4  ;;  %v1018_v2 = vperm.slane %v518_v28, 0  ;;  %v1020_v3 = vperm.slane %v519_v9, 0 }
  0x23   :  { %1799 = vst [vmem:[#allocation27_spill] sm:$0xff] %v1004_v41  ;;  %v1022_v41 = vperm.slane %v520_v23, 0  ;;  %v1024_v8 = vperm.slane %v521_v14, 0  ;;  %v558_v15 = vperm.slane %v972_v62, 1  ;;  %v559_v16 = vperm.slane %v972_v62, 5 }
  0x24   :  { %1800 = vst [vmem:[#allocation28_spill] sm:$0xff] %v1010_v7  ;;  %v1028_v21 = vld [vmem:[#allocation2 + $0x80] sm:$0x77]  ;;  %v1030_v22 = vperm.slane %v522_v42, 0  ;;  %v561_v28 = vperm.slane %v980_v4, 5  ;;  %v562_v23 = vperm.slane %v986_v59, 1 }
  0x25   :  { %1801 = vst [vmem:[#allocation29_spill] sm:$0xff] %v1012_v6  ;;  %v560_v6 = vperm.slane %v980_v4, 1  ;;  %v1036_v9 = vld [vmem:[#allocation2 + $0x88] sm:$0x7]  ;;  %v563_v14 = vperm.slane %v986_v59, 5  ;;  %v565_v62 = vperm.slane %v996_v0, 5 }
  0x26   :  { %1802 = vst [vmem:[#allocation30_spill] sm:$0xff] %v1014_v5  ;;  %v1032_v5 = vperm.slane %v523_v57, 0  ;;  %v1044_v42 = vperm.slane %v525_v38, 0  ;;  %v1046_v57 = vperm.slane %v558_v15, 1  ;;  %v667_v4 = vperm.slane %v1028_v21, 0 }
  0x27   :  { %1803 = vst [vmem:[#allocation31_spill] sm:$0xff] %v1018_v2  ;;  %v682_v59 = vperm.slane %v1028_v21, 1  ;;  %v1054_v2 = vperm.slane %v560_v6, 1  ;;  %v1056_v7 = vperm.slane %v561_v28, 1  ;;  %v684_v38 = vperm.slane %v1036_v9, 1 }
  0x28   :  { %1804 = vst [vmem:[#allocation32_spill] sm:$0xff] %v1020_v3  ;;  %v669_v3 = vperm.slane %v1036_v9, 0  ;;  %v1060_v15 = vperm.slane %v562_v23, 1  ;;  %v1072_v6 = vperm.slane %v667_v4, 0  ;;  %vm720_vm0 = vcmask 31744  }
  0x29   :  { %1805 = vst [vmem:[#allocation33_spill] sm:$0xff] %v1022_v41  ;;  %v1042_v41 = vperm.slane %v524_v33, 0  ;;  %v683_v33 = vperm.slane %v1028_v21, 5 }
  0x2a   :  { %1806 = vst [vmem:[#allocation34_spill] sm:$0xff] %v1024_v8  ;;  %v564_v8 = vperm.slane %v996_v0, 1 }
  0x2b   :  { %1807 = vst [vmem:[#allocation35_spill] sm:$0xff] %v1028_v21 }
  0x2c   :  { %1808 = vst [vmem:[#allocation36_spill] sm:$0xff] %v1030_v22  ;;  %v668_v22 = vperm.slane %v1028_v21, 4  ;;  %v1064_v0 = vperm.slane %v564_v8, 1  ;;  %v1078_v21 = vperm.slane %v682_v59, 1 }
  0x2d   :  { %1809 = vst [vmem:[#allocation37_spill] sm:$0xff] %v1032_v5  ;;  %v1048_v5 = vperm.slane %v559_v16, 1  ;;  %v1062_v16 = vperm.slane %v563_v14, 1  ;;  %v1090_v14 = vperm.slane %v684_v38, 1  ;;  %v1820_v38 = vld [vmem:[#allocation26_spill] sm:$0xff] }
  0x2e   :  { %1810 = vst [vmem:[#allocation38_spill] sm:$0xff] %v1036_v9  ;;  %v1074_v28 = vperm.slane %v668_v22, 0  ;;  %v1816_v22 = vld [vmem:[#allocation23_spill] sm:$0xff] }
  0x2f   :  { %1811 = vst [vmem:[#allocation39_spill] sm:$0xff] %v1044_v42  ;;  %v1822_v9 = vld [vmem:[#allocation27_spill] sm:$0xff] }
  0x30   :  { %1812 = vst [vmem:[#allocation40_spill] sm:$0xff] %v1046_v57 }
  0x31   :  { %1813 = vst [vmem:[#allocation41_spill] sm:$0xff] %v1048_v5  ;;  %v1066_v5 = vperm.slane %v565_v62, 1  ;;  %v1088_v62 = vperm.slane %v683_v33, 1  ;;  %v1818_v33 = vld [vmem:[#allocation24_spill] sm:$0xff] }
  0x32   :  { %1814 = vst [vmem:[#allocation42_spill] sm:$0xff] %v1056_v7  ;;  %v1076_v7 = vperm.slane %v669_v3, 0 }
  0x79   :  { %v1068_v57 = vpop.permute.xlu0 %37  ;;  %v1070_v42 = vpop.permute.xlu1 %90 }
  0x7a   :  { %v1082_v23 = vmul.f32 %v850_v17, %v1068_v57  ;;  %v1086_v8 = vmul.f32 %v852_v18, %v1068_v57  ;;  %v1094_v4 = vmul.f32 %v854_v19, %v1068_v57  ;;  %v1098_v59 = vmul.f32 %v856_v20, %v1068_v57 }
  0x7b   :  { %v1102_v17 = vmul.f32 %v862_v24, %v1068_v57  ;;  %v1106_v18 = vmul.f32 %v864_v25, %v1068_v57  ;;  %v1110_v3 = vmul.f32 %v876_v34, %v1068_v57  ;;  %v1114_v19 = vmul.f32 %v878_v35, %v1068_v57 }
  0x7c   :  { %v1118_v20 = vmul.f32 %v880_v36, %v1070_v42  ;;  %v1122_v24 = vmul.f32 %v882_v37, %v1070_v42  ;;  %v1126_v25 = vmul.f32 %v890_v43, %v1070_v42  ;;  %v1130_v34 = vmul.f32 %v892_v44, %v1070_v42 }
  0x7d   :  { %v1134_v35 = vmul.f32 %v896_v47, %v1070_v42  ;;  %v1138_v36 = vmul.f32 %v898_v48, %v1070_v42  ;;  %v1142_v37 = vmul.f32 %v900_v49, %v1070_v42  ;;  %v1146_v43 = vmul.f32 %v902_v50, %v1070_v42 }
  0x7e   :  { %v1150_v44 = vmul.f32 %v906_v53, %v1068_v57  ;;  %v1154_v47 = vmul.f32 %v908_v54, %v1068_v57  ;;  %v1158_v48 = vmul.f32 %v910_v55, %v1068_v57  ;;  %v1162_v49 = vmul.f32 %v912_v56, %v1068_v57 }
  0x7f   :  { %v1166_v50 = vmul.f32 %v918_v60, %v1068_v57  ;;  %v1170_v53 = vmul.f32 %v920_v61, %v1068_v57  ;;  %v1174_v54 = vmul.f32 %v932_v10, %v1068_v57  ;;  %v1178_v55 = vmul.f32 %v934_v11, %v1068_v57 }
  0x80   :  { %v1182_v56 = vmul.f32 %v936_v12, %v1070_v42  ;;  %v1186_v60 = vmul.f32 %v938_v13, %v1070_v42  ;;  %v1190_v61 = vmul.f32 %v946_v26, %v1070_v42  ;;  %v1194_v10 = vmul.f32 %v948_v27, %v1070_v42 }
  0x81   :  { %v1198_v11 = vmul.f32 %v952_v31, %v1070_v42  ;;  %v1202_v12 = vmul.f32 %v954_v32, %v1070_v42  ;;  %v1206_v13 = vmul.f32 %v956_v39, %v1070_v42  ;;  %v1210_v26 = vmul.f32 %v958_v40, %v1070_v42 }
  0x82   :  { %v1214_v27 = vmul.f32 %v962_v45, %v1068_v57  ;;  %v1218_v31 = vmul.f32 %v964_v46, %v1068_v57  ;;  %v1222_v32 = vmul.f32 %v966_v51, %v1068_v57  ;;  %v1226_v39 = vmul.f32 %v968_v52, %v1068_v57 }
  0x83   :  { %v1230_v40 = vmul.f32 %v974_v63, %v1068_v57  ;;  %v1234_v45 = vmul.f32 %v976_v1, %v1068_v57  ;;  %v1238_v46 = vmul.f32 %v988_v29, %v1068_v57  ;;  %v1242_v51 = vmul.f32 %v990_v30, %v1068_v57 }
  0x84   :  { %v1246_v52 = vmul.f32 %v1816_v22, %v1070_v42  ;;  %v1250_v63 = vmul.f32 %v1818_v33, %v1070_v42  ;;  %v1254_v1 = vmul.f32 %v1820_v38, %v1070_v42  ;;  %v1258_v29 = vmul.f32 %v1822_v9, %v1070_v42 }
  0x85   :  { %1815 = vst [vmem:[#allocation43_spill] sm:$0xff] %v1242_v51  ;;  %v1262_v30 = vmul.f32 %v1008_v58, %v1070_v42  ;;  %v1825_v51 = vld [vmem:[#allocation28_spill] sm:$0xff] }
  0x86   :  { %1817 = vst [vmem:[#allocation23_spill] sm:$0xff] %v1246_v52  ;;  %v1266_v22 = vmul.f32 %v1825_v51, %v1070_v42  ;;  %v1827_v52 = vld [vmem:[#allocation29_spill] sm:$0xff] }
  0x87   :  { %1819 = vst [vmem:[#allocation24_spill] sm:$0xff] %v1250_v63  ;;  %v1270_v33 = vmul.f32 %v1827_v52, %v1070_v42  ;;  %v1829_v63 = vld [vmem:[#allocation30_spill] sm:$0xff] }
  0x88   :  { %1821 = vst [vmem:[#allocation26_spill] sm:$0xff] %v1254_v1  ;;  %v1274_v38 = vmul.f32 %v1829_v63, %v1070_v42  ;;  %v1831_v1 = vld [vmem:[#allocation31_spill] sm:$0xff] }
  0x89   :  { %1823 = vst [vmem:[#allocation27_spill] sm:$0xff] %v1258_v29  ;;  %v1278_v9 = vmul.f32 %v1831_v1, %v1068_v57  ;;  %v1832_v29 = vld [vmem:[#allocation32_spill] sm:$0xff] }
  0x8a   :  { %1824 = vst [vmem:[#allocation44_spill] sm:$0xff] %v1262_v30  ;;  %v1282_v58 = vmul.f32 %v1832_v29, %v1068_v57  ;;  %v1834_v30 = vld [vmem:[#allocation33_spill] sm:$0xff]  ;;  %v1302_v29 = vmul.f32 %v1042_v41, %v1068_v57  ;;  %v1845_v41 = vld [vmem:[#allocation42_spill] sm:$0xff] }
  0x8b   :  { %1826 = vst [vmem:[#allocation28_spill] sm:$0xff] %v1266_v22  ;;  %v1286_v51 = vmul.f32 %v1834_v30, %v1068_v57  ;;  %v1836_v22 = vld [vmem:[#allocation34_spill] sm:$0xff] }
  0x8c   :  { %1828 = vst [vmem:[#allocation29_spill] sm:$0xff] %v1270_v33  ;;  %v1290_v52 = vmul.f32 %v1836_v22, %v1068_v57  ;;  %v1838_v33 = vld [vmem:[#allocation36_spill] sm:$0xff] }
  0x8d   :  { %1830 = vst [vmem:[#allocation30_spill] sm:$0xff] %v1274_v38  ;;  %v1294_v63 = vmul.f32 %v1838_v33, %v1068_v57  ;;  %v1840_v38 = vld [vmem:[#allocation37_spill] sm:$0xff] }
  0x8e   :  { %1833 = vst [vmem:[#allocation31_spill] sm:$0xff] %v1282_v58  ;;  %v1298_v1 = vmul.f32 %v1840_v38, %v1068_v57  ;;  %v1842_v58 = vld [vmem:[#allocation39_spill] sm:$0xff]  ;;  %v1320_v38 = vmul.f32 %v1054_v2, %v1070_v42  ;;  %v1340_v2 = vmul.f32 %v1066_v5, %v1070_v42 }
  0x8f   :  { %1835 = vst [vmem:[#allocation32_spill] sm:$0xff] %v1286_v51  ;;  %v1306_v30 = vmul.f32 %v1842_v58, %v1068_v57  ;;  %v1843_v51 = vld [vmem:[#allocation40_spill] sm:$0xff]  ;;  %v1328_v58 = vmul.f32 %v1060_v15, %v1070_v42  ;;  %v1348_v15 = vmul.f32 %v1074_v28, %v1068_v57 }
  0x90   :  { %1837 = vst [vmem:[#allocation33_spill] sm:$0xff] %v1290_v52  ;;  %v1310_v22 = vmul.f32 %v1843_v51, %v1070_v42  ;;  %v1844_v52 = vld [vmem:[#allocation41_spill] sm:$0xff]  ;;  %v1332_v51 = vmul.f32 %v1062_v16, %v1070_v42  ;;  %v1352_v16 = vmul.f32 %v1076_v7, %v1068_v57 }
  0x91   :  { %1839 = vst [vmem:[#allocation34_spill] sm:$0xff] %v1294_v63  ;;  %v1314_v33 = vmul.f32 %v1844_v52, %v1070_v42  ;;  %v1316_v63 = vpop.permute.xlu0 %78  ;;  %v1336_v52 = vmul.f32 %v1064_v0, %v1070_v42  ;;  %v1356_v0 = vmul.f32 %v1078_v21, %v1070_v42  ;;  %v1372_v21 = vmul.f32 %v1088_v62, %v1070_v42 }
  0x92   :  { %1841 = vst [vmem:[#allocation36_spill] sm:$0xff] %v1302_v29  ;;  %v1324_v29 = vmul.f32 %v1845_v41, %v1070_v42  ;;  %v1344_v41 = vmul.f32 %v1072_v6, %v1068_v57  ;;  %v81_v5 = vadd.f32 %v1316_v63, %v1082_v23  ;;  %v83_v6 = vadd.f32 %v1316_v63, %v1094_v4 }
  0x93   :  { %1846 = vst [vmem:[#allocation37_spill] sm:$0xff] %v1340_v2  ;;  %v82_v2 = vadd.f32 %v1316_v63, %v1086_v8  ;;  %v84_v28 = vadd.f32 %v1316_v63, %v1098_v59  ;;  %v85_v7 = vadd.f32 %v1316_v63, %v1102_v17  ;;  %v86_v57 = vadd.f32 %v1316_v63, %v1106_v18 }
  0x94   :  { %v1376_v23 = vmul.f32 %v1090_v14, %v1070_v42  ;;  %v87_v8 = vadd.f32 %v1316_v63, %v1110_v3  ;;  %v88_v4 = vadd.f32 %v1316_v63, %v1114_v19  ;;  %v1383_v59 = vadd.f32 %v1118_v20, %v81_v5  ;;  %v1850_v5 = vld [vmem:[#allocation24_spill] sm:$0xff] }
  0x95   :  { %v1386_v17 = vadd.f32 %v1122_v24, %v82_v2  ;;  %v1389_v18 = vadd.f32 %v1126_v25, %v83_v6  ;;  %v1392_v62 = vadd.f32 %v1130_v34, %v84_v28  ;;  %v1395_v42 = vadd.f32 %v1134_v35, %v85_v7  ;;  %v1849_v2 = vld [vmem:[#allocation23_spill] sm:$0xff]  ;;  %v1851_v6 = vld [vmem:[#allocation26_spill] sm:$0xff] }
  0x96   :  { %1847 = vst [vmem:[#allocation39_spill] sm:$0xff] %v1376_v23  ;;  %v1398_v14 = vadd.f32 %v1138_v36, %v86_v57  ;;  %v242_v3 = vadd.f32 %v1150_v44, %v1316_v63  ;;  %v243_v19 = vadd.f32 %v1154_v47, %v1316_v63  ;;  %v244_v20 = vadd.f32 %v1158_v48, %v1316_v63  ;;  %v1854_v57 = vld [vmem:[#allocation28_spill] sm:$0xff] }
  0x97   :  { %v245_v24 = vadd.f32 %v1162_v49, %v1316_v63  ;;  %v246_v25 = vadd.f32 %v1166_v50, %v1316_v63  ;;  %v247_v34 = vadd.f32 %v1170_v53, %v1316_v63  ;;  %v1413_v35 = vadd.f32 %v1142_v37, %v87_v8 }
  0x98   :  { %v1416_v36 = vadd.f32 %v1146_v43, %v88_v4  ;;  %v248_v44 = vadd.f32 %v1174_v54, %v1316_v63  ;;  %v249_v47 = vadd.f32 %v1178_v55, %v1316_v63  ;;  %v1423_v48 = vadd.f32 %v1182_v56, %v242_v3  ;;  %v1856_v4 = vld [vmem:[#allocation31_spill] sm:$0xff] }
  0x99   :  { %v1426_v49 = vadd.f32 %v1186_v60, %v243_v19  ;;  %v1429_v50 = vadd.f32 %v1190_v61, %v244_v20  ;;  %v1432_v37 = vadd.f32 %v1194_v10, %v245_v24  ;;  %v1435_v43 = vadd.f32 %v1198_v11, %v246_v25  ;;  %v1857_v19 = vld [vmem:[#allocation32_spill] sm:$0xff]  ;;  %v1858_v24 = vld [vmem:[#allocation33_spill] sm:$0xff] }
  0x9a   :  { %v1438_v53 = vadd.f32 %v1202_v12, %v247_v34  ;;  %v396_v54 = vadd.f32 %v1214_v27, %v1316_v63  ;;  %v397_v55 = vadd.f32 %v1218_v31, %v1316_v63  ;;  %v398_v56 = vadd.f32 %v1222_v32, %v1316_v63  ;;  %v1848_v31 = vld [vmem:[#allocation43_spill] sm:$0xff]  ;;  %v1859_v34 = vld [vmem:[#allocation34_spill] sm:$0xff] }
  0x9b   :  { %v399_v60 = vadd.f32 %v1226_v39, %v1316_v63  ;;  %v400_v61 = vadd.f32 %v1230_v40, %v1316_v63  ;;  %v401_v10 = vadd.f32 %v1234_v45, %v1316_v63  ;;  %v1453_v11 = vadd.f32 %v1206_v13, %v248_v44  ;;  %v1852_v13 = vld [vmem:[#allocation27_spill] sm:$0xff] }
  0x9c   :  { %v1456_v12 = vadd.f32 %v1210_v26, %v249_v47  ;;  %v402_v27 = vadd.f32 %v1238_v46, %v1316_v63  ;;  %v403_v32 = vadd.f32 %v1848_v31, %v1316_v63  ;;  %v1463_v39 = vadd.f32 %v1849_v2, %v396_v54  ;;  %v1853_v26 = vld [vmem:[#allocation44_spill] sm:$0xff]  ;;  %v1860_v54 = vld [vmem:[#allocation29_spill] sm:$0xff] }
  0x9d   :  { %v1466_v40 = vadd.f32 %v1850_v5, %v397_v55  ;;  %v1469_v45 = vadd.f32 %v1851_v6, %v398_v56  ;;  %v1472_v28 = vadd.f32 %v1852_v13, %v399_v60  ;;  %v1475_v7 = vadd.f32 %v1853_v26, %v400_v61  ;;  %v1862_v56 = vld [vmem:[#allocation30_spill] sm:$0xff]  ;;  %v1864_v60 = vld [vmem:[#allocation36_spill] sm:$0xff]  ;;  %v1873_v13 = vld [vmem:[#allocation9_spill] sm:$0xff] }
  0x9e   :  { %v1478_v46 = vadd.f32 %v1854_v57, %v401_v10  ;;  %v550_v8 = vadd.f32 %v1278_v9, %v1316_v63  ;;  %v551_v3 = vadd.f32 %v1856_v4, %v1316_v63  ;;  %v552_v20 = vadd.f32 %v1857_v19, %v1316_v63  ;;  %v1880_v19 = vld [vmem:[#allocation11_spill] sm:$0xff] }
  0x9f   :  { %v553_v25 = vadd.f32 %v1858_v24, %v1316_v63  ;;  %v554_v44 = vadd.f32 %v1859_v34, %v1316_v63  ;;  %v555_v47 = vadd.f32 %v1298_v1, %v1316_v63  ;;  %v1493_v55 = vadd.f32 %v1860_v54, %v402_v27 }
  0xa0   :  { %1855 = vst [vmem:[#allocation40_spill] sm:$0xff] %v1478_v46  ;;  %v1496_v9 = vadd.f32 %v1862_v56, %v403_v32  ;;  %v556_v61 = vadd.f32 %v1864_v60, %v1316_v63  ;;  %v557_v10 = vadd.f32 %v1306_v30, %v1316_v63  ;;  %v1503_v31 = vadd.f32 %v1310_v22, %v550_v8  ;;  %v1877_v8 = vld [vmem:[#allocation10_spill] sm:$0xff]  ;;  %v1882_v60 = vld [vmem:[#allocation13_spill] sm:$0xff] }
  0xa1   :  { %1861 = vst [vmem:[#allocation41_spill] sm:$0xff] %v1493_v55  ;;  %v1506_v2 = vadd.f32 %v1314_v33, %v551_v3  ;;  %v1509_v1 = vadd.f32 %v1320_v38, %v552_v20  ;;  %v1512_v27 = vadd.f32 %v1324_v29, %v553_v25  ;;  %v1515_v32 = vadd.f32 %v1328_v58, %v554_v44  ;;  %v1872_v38 = vld [vmem:[#allocation8_spill] sm:$0xff]  ;;  %v1874_v58 = vld [vmem:[#allocation37_spill] sm:$0xff] }
  0xa2   :  { %1863 = vst [vmem:[#allocation42_spill] sm:$0xff] %v1496_v9  ;;  %v1518_v5 = vadd.f32 %v1332_v51, %v555_v47  ;;  %v679_v30 = vadd.f32 %v1344_v41, %v1316_v63  ;;  %v680_v22 = vadd.f32 %v1348_v15, %v1316_v63  ;;  %v1525_v33 = vadd.f32 %v1336_v52, %v556_v61 }
  0xa3   :  { %1865 = vst [vmem:[#allocation43_spill] sm:$0xff] %v1503_v31  ;;  %v137_v6 = vperm.slane %v1872_v38, 2  ;;  %v138_v29 = vperm.slane %v1872_v38, 6  ;;  %v139_v26 = vperm.slane %v1873_v13, 2  ;;  %v1531_v57 = vadd.f32 %v1874_v58, %v557_v10 }
  0xa4   :  { %1866 = vst [vmem:[#allocation23_spill] sm:$0xff] %v1506_v2  ;;  %v1535_v51 = vadd.f32 %v1352_v16, %v1316_v63  ;;  %v140_v41 = vperm.slane %v1873_v13, 6  ;;  %v141_v15 = vperm.slane %v1877_v8, 2  ;;  %v1540_v52 = vadd.f32 %v1356_v0, %v679_v30  ;;  %v1881_v0 = vld [vmem:[#allocation12_spill] sm:$0xff]  ;;  %v1883_v30 = vld [vmem:[#allocation14_spill] sm:$0xff] }
  0xa5   :  { %1867 = vst [vmem:[#allocation24_spill] sm:$0xff] %v1509_v1  ;;  %v1543_v4 = vadd.f32 %v1372_v21, %v680_v22  ;;  %v142_v3 = vperm.slane %v1877_v8, 6  ;;  %v143_v20 = vperm.slane %v1880_v19, 2  ;;  %v144_v24 = vperm.slane %v1880_v19, 6 }
  0xa6   :  { %1868 = vst [vmem:[#allocation26_spill] sm:$0xff] %v1512_v27  ;;  %v153_v25 = vperm.slane %v137_v6, 2  ;;  %v154_v34 = vperm.slane %v138_v29, 2  ;;  %v155_v63 = vperm.slane %v139_v26, 2  ;;  %v156_v16 = vperm.slane %v140_v41, 2  ;;  %v1884_v6 = vld [vmem:[#allocation15_spill] sm:$0xff] }
  0xa7   :  { %1869 = vst [vmem:[#allocation27_spill] sm:$0xff] %v1515_v32  ;;  %v1548_v44 = vperm.slane %v141_v15, 2  ;;  %v1550_v47 = vperm.slane %v142_v3, 2  ;;  %v1552_v54 = vperm.slane %v143_v20, 2  ;;  %v290_v56 = vperm.slane %v1881_v0, 2  ;;  %v1890_v32 = vld [vmem:[#allocation21_spill] sm:$0xff] }
  0xa8   :  { %1870 = vst [vmem:[#allocation44_spill] sm:$0xff] %v1518_v5  ;;  %v291_v21 = vperm.slane %v1881_v0, 6  ;;  %v292_v61 = vperm.slane %v1882_v60, 2  ;;  %v293_v10 = vperm.slane %v1882_v60, 6  ;;  %v294_v22 = vperm.slane %v1883_v30, 2  ;;  %v1885_v0 = vld [vmem:[#allocation16_spill] sm:$0xff] }
  0xa9   :  { %1871 = vst [vmem:[#allocation28_spill] sm:$0xff] %v1525_v33  ;;  %v295_v38 = vperm.slane %v1883_v30, 6  ;;  %v296_v29 = vperm.slane %v1884_v6, 2  ;;  %v297_v13 = vperm.slane %v1884_v6, 6  ;;  %v160_v26 = vperm.slane %v144_v24, 2  ;;  %v1886_v6 = vld [vmem:[#allocation17_spill] sm:$0xff] }
  0xaa   :  { %1875 = vst [vmem:[#allocation31_spill] sm:$0xff] %v1531_v57  ;;  %v1562_v58 = vperm.slane %v290_v56, 2  ;;  %v1564_v41 = vperm.slane %v291_v21, 2  ;;  %v1566_v8 = vperm.slane %v292_v61, 2  ;;  %v1568_v15 = vperm.slane %v293_v10, 2  ;;  %v1887_v61 = vld [vmem:[#allocation18_spill] sm:$0xff] }
  0xab   :  { %1876 = vst [vmem:[#allocation32_spill] sm:$0xff] %v1535_v51  ;;  %v1570_v3 = vperm.slane %v294_v22, 2  ;;  %v1572_v19 = vperm.slane %v295_v38, 2  ;;  %v1574_v20 = vperm.slane %v296_v29, 2  ;;  %v444_v60 = vperm.slane %v1885_v0, 2  ;;  %v1888_v22 = vld [vmem:[#allocation19_spill] sm:$0xff] }
  0xac   :  { %1878 = vst [vmem:[#allocation33_spill] sm:$0xff] %v1540_v52  ;;  %v445_v30 = vperm.slane %v1885_v0, 6  ;;  %v446_v24 = vperm.slane %v1886_v6, 2  ;;  %v447_v56 = vperm.slane %v1886_v6, 6  ;;  %v1580_v21 = vperm.slane %v297_v13, 2  ;;  %v1889_v33 = vld [vmem:[#allocation20_spill] sm:$0xff] }
  0xad   :  { %1879 = vst [vmem:[#allocation34_spill] sm:$0xff] %v1543_v4  ;;  %v448_v4 = vperm.slane %v1887_v61, 2  ;;  %v449_v10 = vperm.slane %v1887_v61, 6  ;;  %v450_v52 = vperm.slane %v1888_v22, 2  ;;  %v451_v38 = vperm.slane %v1888_v22, 6 }
  0xae   :  { %v1586_v29 = vperm.slane %v444_v60, 2  ;;  %v1588_v23 = vperm.slane %v445_v30, 2  ;;  %v1590_v51 = vperm.slane %v446_v24, 2  ;;  %v1592_v0 = vperm.slane %v447_v56, 2  ;;  %v1891_v30 = vld [vmem:[#allocation22_spill] sm:$0xff]  ;;  %v1892_v56 = vld [vmem:[#allocation25_spill] sm:$0xff] }
  0xaf   :  { %v1594_v57 = vperm.slane %v448_v4, 2  ;;  %v1596_v13 = vperm.slane %v449_v10, 2  ;;  %v1598_v6 = vperm.slane %v450_v52, 2  ;;  %v598_v61 = vperm.slane %v1889_v33, 2 }
  0xb0   :  { %v599_v5 = vperm.slane %v1889_v33, 6  ;;  %v600_v22 = vperm.slane %v1890_v32, 2  ;;  %v601_v60 = vperm.slane %v1890_v32, 6  ;;  %v602_v27 = vperm.slane %v1891_v30, 2  ;;  %v1616_v33 = vpop.permute.xlu1 %134 }
  0xb1   :  { %v603_v24 = vperm.slane %v1891_v30, 6  ;;  %v604_v1 = vperm.slane %v1892_v56, 2  ;;  %v605_v4 = vperm.slane %v1892_v56, 6  ;;  %v1608_v10 = vperm.slane %v451_v38, 2  ;;  %v1896_v38 = vld [vmem:[#allocation35_spill] sm:$0xff] }
  0xb2   :  { %v1610_v52 = vperm.slane %v598_v61, 2  ;;  %v1612_v2 = vperm.slane %v599_v5, 2  ;;  %v1614_v31 = vperm.slane %v600_v22, 2  ;;  %v1618_v9 = vperm.slane %v601_v60, 2  ;;  %v1897_v5 = vld [vmem:[#allocation38_spill] sm:$0xff] }
  0xb3   :  { %v1620_v32 = vperm.slane %v602_v27, 2  ;;  %v1622_v55 = vperm.slane %v603_v24, 2  ;;  %v1624_v30 = vperm.slane %v604_v1, 2  ;;  %v1626_v46 = vperm.slane %v605_v4, 2 }
  0xb4   :  { %1893 = vst [vmem:[#allocation29_spill] sm:$0xff] %v1612_v2  ;;  %v697_v56 = vperm.slane %v1896_v38, 2  ;;  %v698_v61 = vperm.slane %v1896_v38, 6  ;;  %v699_v2 = vperm.slane %v1897_v5, 2  ;;  %v161_v22 = vmul.f32 %v153_v25, %v1616_v33 }
  0xb5   :  { %1894 = vst [vmem:[#allocation30_spill] sm:$0xff] %v1614_v31  ;;  %v162_v31 = vmul.f32 %v154_v34, %v1616_v33  ;;  %v163_v60 = vmul.f32 %v155_v63, %v1616_v33  ;;  %v164_v27 = vmul.f32 %v156_v16, %v1616_v33  ;;  %v166_v38 = vmul.f32 %v1550_v47, %v1616_v33 }
  0xb6   :  { %1895 = vst [vmem:[#allocation36_spill] sm:$0xff] %v1626_v46  ;;  %v1635_v24 = vperm.slane %v697_v56, 2  ;;  %v1637_v1 = vperm.slane %v698_v61, 2  ;;  %v1639_v4 = vperm.slane %v699_v2, 2  ;;  %v165_v46 = vmul.f32 %v1548_v44, %v1616_v33 }
  0xb7   :  { %v167_v25 = vmul.f32 %v1552_v54, %v1616_v33  ;;  %v168_v34 = vmul.f32 %v160_v26, %v1616_v33  ;;  %v169_v63 = vadd.f32 %v161_v22, %v1383_v59  ;;  %v170_v16 = vadd.f32 %v162_v31, %v1386_v17 }
  0xb8   :  { %1898 = vst [vmem:[#allocation8_spill] sm:$0xff] %v1635_v24  ;;  %v171_v56 = vadd.f32 %v163_v60, %v1389_v18  ;;  %v172_v2 = vadd.f32 %v164_v27, %v1392_v62  ;;  %v173_v61 = vadd.f32 %v165_v46, %v1395_v42  ;;  %v174_v44 = vadd.f32 %v166_v38, %v1398_v14 }
  0xb9   :  { %1899 = vst [vmem:[#allocation9_spill] sm:$0xff] %v1637_v1  ;;  %v175_v5 = vadd.f32 %v167_v25, %v1413_v35  ;;  %v176_v47 = vadd.f32 %v168_v34, %v1416_v36  ;;  %v178_v54 = vmax.f32 %v170_v16, 0.0  ;;  %v314_v35 = vmul.f32 %v1562_v58, %v1616_v33 }
  0xba   :  { %1900 = vst [vmem:[#allocation37_spill] sm:$0xff] %v1639_v4  ;;  %v177_v4 = vmax.f32 %v169_v63, 0.0  ;;  %v179_v1 = vmax.f32 %v171_v56, 0.0  ;;  %v180_v26 = vmax.f32 %v172_v2, 0.0  ;;  %v181_v24 = vmax.f32 %v173_v61, 0.0 }
  0xbb   :  { %v182_v59 = vmax.f32 %v174_v44, 0.0  ;;  %v183_v22 = vmax.f32 %v175_v5, 0.0  ;;  %v184_v17 = vmax.f32 %v176_v47, 0.0  ;;  %v186_v18 = vmin.f32 %v178_v54, 1.0 }
  0xbc   :  { %v185_v31 = vmin.f32 %v177_v4, 1.0  ;;  %v187_v60 = vmin.f32 %v179_v1, 1.0  ;;  %v188_v62 = vmin.f32 %v180_v26, 1.0  ;;  %v189_v27 = vmin.f32 %v181_v24, 1.0 }
  0xbd   :  { %v190_v42 = vmin.f32 %v182_v59, 1.0  ;;  %v191_v46 = vmin.f32 %v183_v22, 1.0  ;;  %v192_v14 = vmin.f32 %v184_v17, 1.0  ;;  %194 = vst [vmem:[#allocation5 + $0x8] sm:$0xff] %v186_v18  ;;  %v315_v36 = vmul.f32 %v1564_v41, %v1616_v33 }
  0xbe   :  { %193 = vst [vmem:[#allocation5] sm:$0xff] %v185_v31  ;;  %v316_v38 = vmul.f32 %v1566_v8, %v1616_v33  ;;  %v317_v4 = vmul.f32 %v1568_v15, %v1616_v33  ;;  %v318_v24 = vmul.f32 %v1570_v3, %v1616_v33  ;;  %v319_v1 = vmul.f32 %v1572_v19, %v1616_v33 }
  0xbf   :  { %195 = vst [vmem:[#allocation5 + $0x10] sm:$0xff] %v187_v60  ;;  %v320_v58 = vmul.f32 %v1574_v20, %v1616_v33  ;;  %v321_v25 = vmul.f32 %v1580_v21, %v1616_v33  ;;  %v322_v41 = vadd.f32 %v314_v35, %v1423_v48  ;;  %v323_v8 = vadd.f32 %v315_v36, %v1426_v49 }
  0xc0   :  { %196 = vst [vmem:[#allocation5 + $0x18] sm:$0xff] %v188_v62  ;;  %v324_v15 = vadd.f32 %v316_v38, %v1429_v50  ;;  %v325_v34 = vadd.f32 %v317_v4, %v1432_v37  ;;  %v326_v3 = vadd.f32 %v318_v24, %v1435_v43  ;;  %v327_v19 = vadd.f32 %v319_v1, %v1438_v53  ;;  %v1901_v62 = vld [vmem:[#allocation40_spill] sm:$0xff] }
  0xc1   :  { %197 = vst [vmem:[#allocation5 + $0x20] sm:$0xff] %v189_v27  ;;  %v328_v63 = vadd.f32 %v320_v58, %v1453_v11  ;;  %v329_v20 = vadd.f32 %v321_v25, %v1456_v12  ;;  %v330_v16 = vmax.f32 %v322_v41, 0.0  ;;  %v331_v21 = vmax.f32 %v323_v8, 0.0  ;;  %v1902_v27 = vld [vmem:[#allocation41_spill] sm:$0xff] }
  0xc2   :  { %198 = vst [vmem:[#allocation5 + $0x28] sm:$0xff] %v190_v42  ;;  %v332_v48 = vmax.f32 %v324_v15, 0.0  ;;  %v333_v56 = vmax.f32 %v325_v34, 0.0  ;;  %v334_v2 = vmax.f32 %v326_v3, 0.0  ;;  %v335_v49 = vmax.f32 %v327_v19, 0.0  ;;  %v1904_v15 = vld [vmem:[#allocation29_spill] sm:$0xff] }
  0xc3   :  { %199 = vst [vmem:[#allocation5 + $0x30] sm:$0xff] %v191_v46  ;;  %v336_v50 = vmax.f32 %v328_v63, 0.0  ;;  %v337_v61 = vmax.f32 %v329_v20, 0.0  ;;  %v338_v37 = vmin.f32 %v330_v16, 1.0  ;;  %v339_v43 = vmin.f32 %v331_v21, 1.0  ;;  %v1905_v3 = vld [vmem:[#allocation30_spill] sm:$0xff] }
  0xc4   :  { %200 = vst [vmem:[#allocation5 + $0x38] sm:$0xff] %v192_v14  ;;  %v340_v44 = vmin.f32 %v332_v48, 1.0  ;;  %v341_v5 = vmin.f32 %v333_v56, 1.0  ;;  %v342_v53 = vmin.f32 %v334_v2, 1.0  ;;  %v343_v47 = vmin.f32 %v335_v49, 1.0  ;;  %v1906_v21 = vld [vmem:[#allocation36_spill] sm:$0xff] }
  0xc5   :  { %v344_v11 = vmin.f32 %v336_v50, 1.0  ;;  %v345_v54 = vmin.f32 %v337_v61, 1.0  ;;  %347 = vst [vmem:[#allocation5 + $0x40] sm:$0xff] %v338_v37  ;;  %v468_v12 = vmul.f32 %v1586_v29, %v1616_v33  ;;  %v469_v26 = vmul.f32 %v1588_v23, %v1616_v33  ;;  %v1907_v56 = vld [vmem:[#allocation43_spill] sm:$0xff]  ;;  %v1909_v61 = vld [vmem:[#allocation24_spill] sm:$0xff]  ;;  %v1910_v37 = vld [vmem:[#allocation26_spill] sm:$0xff] }
  0xc6   :  { %348 = vst [vmem:[#allocation5 + $0x48] sm:$0xff] %v339_v43  ;;  %v470_v59 = vmul.f32 %v1590_v51, %v1616_v33  ;;  %v471_v22 = vmul.f32 %v1592_v0, %v1616_v33  ;;  %v472_v17 = vmul.f32 %v1594_v57, %v1616_v33  ;;  %v473_v31 = vmul.f32 %v1596_v13, %v1616_v33  ;;  %v1908_v49 = vld [vmem:[#allocation23_spill] sm:$0xff] }
  0xc7   :  { %349 = vst [vmem:[#allocation5 + $0x50] sm:$0xff] %v340_v44  ;;  %v474_v29 = vmul.f32 %v1598_v6, %v1616_v33  ;;  %v475_v18 = vmul.f32 %v1608_v10, %v1616_v33  ;;  %v476_v23 = vadd.f32 %v468_v12, %v1463_v39  ;;  %v477_v51 = vadd.f32 %v469_v26, %v1466_v40  ;;  %v1903_v6 = vld [vmem:[#allocation42_spill] sm:$0xff] }
  0xc8   :  { %350 = vst [vmem:[#allocation5 + $0x58] sm:$0xff] %v341_v5  ;;  %v478_v0 = vadd.f32 %v470_v59, %v1469_v45  ;;  %v479_v60 = vadd.f32 %v471_v22, %v1472_v28  ;;  %v480_v57 = vadd.f32 %v472_v17, %v1475_v7  ;;  %v481_v13 = vadd.f32 %v473_v31, %v1901_v62  ;;  %v1912_v5 = vld [vmem:[#allocation44_spill] sm:$0xff]  ;;  %v1916_v31 = vld [vmem:[#allocation39_spill] sm:$0xff] }
  0xc9   :  { %351 = vst [vmem:[#allocation5 + $0x60] sm:$0xff] %v342_v53  ;;  %v482_v42 = vadd.f32 %v474_v29, %v1902_v27  ;;  %v483_v46 = vadd.f32 %v475_v18, %v1903_v6  ;;  %v484_v14 = vmax.f32 %v476_v23, 0.0  ;;  %v485_v10 = vmax.f32 %v477_v51, 0.0  ;;  %v1913_v53 = vld [vmem:[#allocation28_spill] sm:$0xff] }
  0xca   :  { %352 = vst [vmem:[#allocation5 + $0x68] sm:$0xff] %v343_v47  ;;  %v486_v39 = vmax.f32 %v478_v0, 0.0  ;;  %v487_v35 = vmax.f32 %v479_v60, 0.0  ;;  %v488_v36 = vmax.f32 %v480_v57, 0.0  ;;  %v489_v40 = vmax.f32 %v481_v13, 0.0  ;;  %v1915_v17 = vld [vmem:[#allocation32_spill] sm:$0xff] }
  0xcb   :  { %353 = vst [vmem:[#allocation5 + $0x70] sm:$0xff] %v344_v11  ;;  %v490_v45 = vmax.f32 %v482_v42, 0.0  ;;  %v491_v38 = vmax.f32 %v483_v46, 0.0  ;;  %v492_v28 = vmin.f32 %v484_v14, 1.0  ;;  %v493_v7 = vmin.f32 %v485_v10, 1.0  ;;  %v1917_v27 = vld [vmem:[#allocation8_spill] sm:$0xff] }
  0xcc   :  { %354 = vst [vmem:[#allocation5 + $0x78] sm:$0xff] %v345_v54  ;;  %v494_v4 = vmin.f32 %v486_v39, 1.0  ;;  %v495_v24 = vmin.f32 %v487_v35, 1.0  ;;  %v496_v1 = vmin.f32 %v488_v36, 1.0  ;;  %v497_v58 = vmin.f32 %v489_v40, 1.0  ;;  %v1918_v46 = vld [vmem:[#allocation9_spill] sm:$0xff] }
  0xcd   :  { %v498_v25 = vmin.f32 %v490_v45, 1.0  ;;  %v499_v41 = vmin.f32 %v491_v38, 1.0  ;;  %501 = vst [vmem:[#allocation5 + $0x80] sm:$0xff] %v492_v28  ;;  %v622_v8 = vmul.f32 %v1610_v52, %v1616_v33  ;;  %v623_v34 = vmul.f32 %v1904_v15, %v1616_v33  ;;  %v1919_v10 = vld [vmem:[#allocation37_spill] sm:$0xff]  ;;  %v1921_v38 = vld [vmem:[#allocation34_spill] sm:$0xff] }
  0xce   :  { %502 = vst [vmem:[#allocation5 + $0x88] sm:$0xff] %v493_v7  ;;  %v624_v19 = vmul.f32 %v1905_v3, %v1616_v33  ;;  %v625_v63 = vmul.f32 %v1618_v9, %v1616_v33  ;;  %v626_v20 = vmul.f32 %v1620_v32, %v1616_v33  ;;  %v627_v16 = vmul.f32 %v1622_v55, %v1616_v33  ;;  %v1911_v32 = vld [vmem:[#allocation27_spill] sm:$0xff]  ;;  %v1920_v36 = vld [vmem:[#allocation33_spill] sm:$0xff] }
  0xcf   :  { %503 = vst [vmem:[#allocation5 + $0x90] sm:$0xff] %v494_v4  ;;  %v628_v52 = vmul.f32 %v1624_v30, %v1616_v33  ;;  %v629_v48 = vmul.f32 %v1906_v21, %v1616_v33  ;;  %v630_v2 = vadd.f32 %v622_v8, %v1907_v56  ;;  %v631_v50 = vadd.f32 %v623_v34, %v1908_v49  ;;  %v1914_v30 = vld [vmem:[#allocation31_spill] sm:$0xff] }
  0xd0   :  { %504 = vst [vmem:[#allocation5 + $0x98] sm:$0xff] %v495_v24  ;;  %v632_v9 = vadd.f32 %v624_v19, %v1909_v61  ;;  %v633_v43 = vadd.f32 %v625_v63, %v1910_v37  ;;  %v634_v44 = vadd.f32 %v626_v20, %v1911_v32  ;;  %v635_v55 = vadd.f32 %v627_v16, %v1912_v5 }
  0xd1   :  { %505 = vst [vmem:[#allocation5 + $0xa0] sm:$0xff] %v496_v1  ;;  %v636_v47 = vadd.f32 %v628_v52, %v1913_v53  ;;  %v637_v11 = vadd.f32 %v629_v48, %v1914_v30  ;;  %v638_v54 = vmax.f32 %v630_v2, 0.0  ;;  %v639_v12 = vmax.f32 %v631_v50, 0.0 }
  0xd2   :  { %506 = vst [vmem:[#allocation5 + $0xa8] sm:$0xff] %v497_v58  ;;  %v640_v26 = vmax.f32 %v632_v9, 0.0  ;;  %v641_v59 = vmax.f32 %v633_v43, 0.0  ;;  %v642_v22 = vmax.f32 %v634_v44, 0.0  ;;  %v696_v29 = vadd.f32 %v1916_v31, %v1915_v17 }
  0xd3   :  { %507 = vst [vmem:[#allocation5 + $0xb0] sm:$0xff] %v498_v25  ;;  %v643_v18 = vmax.f32 %v635_v55, 0.0  ;;  %v644_v23 = vmax.f32 %v636_v47, 0.0  ;;  %v646_v51 = vmin.f32 %v638_v54, 1.0  ;;  %v645_v0 = vmax.f32 %v637_v11, 0.0 }
  0xd4   :  { %508 = vst [vmem:[#allocation5 + $0xb8] sm:$0xff] %v499_v41  ;;  %v647_v60 = vmin.f32 %v639_v12, 1.0  ;;  %v648_v57 = vmin.f32 %v640_v26, 1.0  ;;  %v649_v62 = vmin.f32 %v641_v59, 1.0  ;;  %v650_v13 = vmin.f32 %v642_v22, 1.0 }
  0xd5   :  { %655 = vst [vmem:[#allocation5 + $0xc0] sm:$0xff] %v646_v51  ;;  %v706_v42 = vmul.f32 %v1917_v27, %v1616_v33  ;;  %v651_v6 = vmin.f32 %v643_v18, 1.0  ;;  %v707_v14 = vmul.f32 %v1918_v46, %v1616_v33  ;;  %v708_v39 = vmul.f32 %v1919_v10, %v1616_v33 }
  0xd6   :  { %656 = vst [vmem:[#allocation5 + $0xc8] sm:$0xff] %v647_v60  ;;  %v652_v35 = vmin.f32 %v644_v23, 1.0  ;;  %v653_v45 = vmin.f32 %v645_v0, 1.0 }
  0xd7   :  { %657 = vst [vmem:[#allocation5 + $0xd0] sm:$0xff] %v648_v57  ;;  %v709_v40 = vadd.f32 %v706_v42, %v1920_v36  ;;  %v710_v28 = vadd.f32 %v707_v14, %v1921_v38  ;;  %v711_v7 = vadd.f32 %v708_v39, %v696_v29 }
  0xd8   :  { %658 = vst [vmem:[#allocation5 + $0xd8] sm:$0xff] %v649_v62 }
  0xd9   :  { %659 = vst [vmem:[#allocation5 + $0xe0] sm:$0xff] %v650_v13  ;;  %v712_v4 = vmax.f32 %v709_v40, 0.0  ;;  %v713_v24 = vmax.f32 %v710_v28, 0.0  ;;  %v714_v1 = vmax.f32 %v711_v7, 0.0 }
  0xda   :  { %660 = vst [vmem:[#allocation5 + $0xe8] sm:$0xff] %v651_v6 }
  0xdb   :  { %661 = vst [vmem:[#allocation5 + $0xf0] sm:$0xff] %v652_v35  ;;  %v715_v33 = vmin.f32 %v712_v4, 1.0  ;;  %v716_v58 = vmin.f32 %v713_v24, 1.0  ;;  %v717_v25 = vmin.f32 %v714_v1, 1.0 }
  0xdc   :  { %662 = vst [vmem:[#allocation5 + $0xf8] sm:$0xff] %v653_v45 }
  0xdd   :  { %718 = vst [vmem:[#allocation5 + $0x100] sm:$0xff] %v715_v33 }
  0xde   :  { %719 = vst [vmem:[#allocation5 + $0x108] sm:$0xff] %v716_v58 }
  0xdf   :  { %721 = vst.msk [vmem:[#allocation5 + $0x110] sm:$0xff] %vm720_vm0, %v717_v25 }
  0xe0   :  { %732 = dma.vmem_to_hbm [thread:$0]  %s728_s1, 4480, %s730_s22, [#allocation4]  }
  0xe1   :  { %798 = dma.done.wait [#allocation4], 4480  }
  0xe2   :  { %799 = vsyncadd [#allocation4], 4294962816 }
  0xe3   :  { %737 = vsyncpa [#allocation3], 1 }
  0xe4   :  { %738 = vsyncpa [#allocation4], 1 }

</bundles_post_ra>
